<compile_context>
chip_gen: v5e
topology: v5e:2x2
jax: 0.10.0
libtpu: 0.0.40
codegen_flags: <defaults>
</compile_context>

<pallas_src>
import functools

import jax
import jax.numpy as jnp
from jax.experimental import pallas as pl
from jax.experimental.pallas import tpu as pltpu

BN_EPS = 1e-5


# ----------------------------------------------------------------------------
# Fused kernel: full EncoderLayer forward for ONE image per grid step.
# Layout: channels on the sublane axis, pooled pixels (M = Hh*Wh) on lanes.
# ----------------------------------------------------------------------------
def _encoder_fused_kernel(*refs, num_conv, growth_rate):
    g = growth_rate
    x_ref, pool_ref, shift_ref, wtd_ref, btd_ref = refs[:5]
    o_ref = refs[-1]
    layer_refs = [refs[5 + 6 * i: 5 + 6 * (i + 1)] for i in range(num_conv)]

    # ---- TransitionDown.  AvgPool2x2 commutes with the per-pixel affine
    # BN + 1x1 conv (Dropout2d is identity in inference), so pool FIRST via a
    # matmul with the 0.25-pooling operator, then apply the BN-folded 1x1 conv.
    x = x_ref[0]                                             # (Cin, H*W) f32
    pooled = jnp.dot(x.astype(jnp.bfloat16), pool_ref[...],
                     preferred_element_type=jnp.float32)     # (Cin, M) f32
    feat = jnp.dot(wtd_ref[...], pooled.astype(jnp.bfloat16),
                   preferred_element_type=jnp.float32) + btd_ref[...]

    # ---- DenseBlock.  `feat` is the running channel-concat (Ctot, M); it
    # never touches HBM until the single final output store.
    for i in range(num_conv):
        s1_ref, sh1_ref, w1t_ref, b1_ref, w2s_ref, b2_ref = layer_refs[i]

        # ConvBlock#1: BN1 -> ReLU -> 1x1 conv, with ConvBlock#2's BN2 + ReLU
        # folded into the 1x1 weights/bias as an epilogue.  One dot, K = Ctot.
        a = jnp.maximum(feat * s1_ref[...] + sh1_ref[...], 0.0)
        z = jnp.maximum(
            jnp.dot(w1t_ref[...], a.astype(jnp.bfloat16),
                    preferred_element_type=jnp.float32) + b1_ref[...], 0.0)

        # ConvBlock#2: 3x3 conv (stride 1, pad 1).  One stacked-weight matmul
        # does all 9 per-tap channel contractions; each tap is then routed to
        # its output pixels by a (M, M) zero-padded shift/selection matmul.
        taps = jnp.dot(w2s_ref[...], z.astype(jnp.bfloat16),
                       preferred_element_type=jnp.float32)   # (9g, M)
        acc = jnp.zeros((g, taps.shape[1]), jnp.float32)
        for t in range(9):
            acc = acc + jnp.dot(taps[t * g:(t + 1) * g].astype(jnp.bfloat16),
                                shift_ref[t],
                                preferred_element_type=jnp.float32)
        feat = jnp.concatenate([feat, acc + b2_ref[...]], axis=0)

    o_ref[0] = feat                                          # (C_final, M)


# ----------------------------------------------------------------------------
# Spatial operators (depend only on H, W): pooling matrix + 9 shift matrices.
# Entries are exactly representable in bf16 (0, 1, 0.25).
# ----------------------------------------------------------------------------
def make_spatial_operators(H, W):
    Hh, Wh = H // 2, W // 2
    M = Hh * Wh
    # AvgPool2x2 as (H*W, M) matmul operator.
    r = jnp.arange(H * W)
    iy, ix = r // W, r % W
    col = (iy // 2) * Wh + (ix // 2)
    pool = 0.25 * (col[:, None] == jnp.arange(M)[None, :]).astype(jnp.float32)
    # 3x3 taps: shift-with-zero-padding selection operators on the pooled grid.
    p = jnp.arange(M)
    py, px = p // Wh, p % Wh
    shifts = []
    for dy in range(3):
        for dx in range(3):
            qy, qx = py + dy - 1, px + dx - 1
            valid = (qy >= 0) & (qy < Hh) & (qx >= 0) & (qx < Wh)
            q = jnp.where(valid, qy * Wh + qx, -1)
            shifts.append(
                (jnp.arange(M)[:, None] == q[None, :]).astype(jnp.float32))
    return dict(pool=pool.astype(jnp.bfloat16),
                shift=jnp.stack(shifts, axis=0).astype(jnp.bfloat16))


# ----------------------------------------------------------------------------
# Parameters (synthetic, deterministic), mirroring the PyTorch module.
# ----------------------------------------------------------------------------
def _bn_params(key, ch):
    k1, k2, k3, k4 = jax.random.split(key, 4)
    return dict(
        gamma=1.0 + 0.1 * jax.random.normal(k1, (ch,), jnp.float32),
        beta=0.1 * jax.random.normal(k2, (ch,), jnp.float32),
        mean=0.1 * jax.random.normal(k3, (ch,), jnp.float32),
        var=1.0 + 0.1 * jax.random.uniform(k4, (ch,), jnp.float32),
    )


def _bn_fold(bn):
    scale = bn["gamma"] * jax.lax.rsqrt(bn["var"] + BN_EPS)
    shift = bn["beta"] - bn["mean"] * scale
    return scale, shift


def make_params(key, in_ch, num_conv, growth_rate):
    keys = jax.random.split(key, 3 + 6 * num_conv)
    ki = iter(keys)
    params = {"td": dict(
        bn=_bn_params(next(ki), in_ch),
        w=0.1 * jax.random.normal(next(ki), (in_ch, in_ch), jnp.float32),
        b=0.1 * jax.random.normal(next(ki), (in_ch,), jnp.float32),
    ), "db": []}
    for i in range(num_conv):
        ci = in_ch + i * growth_rate
        c_mid = 4 * growth_rate
        params["db"].append(dict(
            bn1=_bn_params(next(ki), ci),
            w1=0.1 * jax.random.normal(next(ki), (ci, c_mid), jnp.float32),
            b1=0.1 * jax.random.normal(next(ki), (c_mid,), jnp.float32),
            bn2=_bn_params(next(ki), c_mid),
            w2=0.1 * jax.random.normal(next(ki), (3, 3, c_mid, growth_rate),
                                       jnp.float32),
            b2=0.1 * jax.random.normal(next(ki), (growth_rate,), jnp.float32),
        ))
    return params


def fold_params(raw, *, num_conv, growth_rate):
    """Fold BN stats into conv weights (f32), transpose for the (C, M) layout,
    cast MXU operands to bf16, keep biases/affines in f32."""
    g = growth_rate
    s0, sh0 = _bn_fold(raw["td"]["bn"])
    wtd = s0[:, None] * raw["td"]["w"]                       # (Cin, Cin)
    btd = sh0 @ raw["td"]["w"] + raw["td"]["b"]
    prepared = {"wtd_t": wtd.T.astype(jnp.bfloat16),
                "btd": btd.reshape(-1, 1).astype(jnp.float32),
                "db": []}
    for i in range(num_conv):
        lp = raw["db"][i]
        s1, sh1 = _bn_fold(lp["bn1"])
        s2, sh2 = _bn_fold(lp["bn2"])
        w1f = lp["w1"] * s2[None, :]                         # fold BN2 into cols
        b1f = lp["b1"] * s2 + sh2
        w2 = lp["w2"].reshape(9, 4 * g, g)                   # taps (dy, dx) major
        w2s = jnp.transpose(w2, (0, 2, 1)).reshape(9 * g, 4 * g)
        prepared["db"].append(dict(
            s1=s1.reshape(-1, 1).astype(jnp.float32),
            sh1=sh1.reshape(-1, 1).astype(jnp.float32),
            w1t=w1f.T.astype(jnp.bfloat16),                  # (4g, Ci)
            b1=b1f.reshape(-1, 1).astype(jnp.float32),
            w2s=w2s.astype(jnp.bfloat16),                    # (9g, 4g)
            b2=lp["b2"].reshape(-1, 1).astype(jnp.float32),
        ))
    return prepared


# ----------------------------------------------------------------------------
# Forward pass: one pallas_call, grid over batch images.
# ----------------------------------------------------------------------------
def encoder_layer_forward(x_nchw, params, consts, *, in_ch, num_conv,
                          growth_rate):
    N, C, H, W = x_nchw.shape
    assert C == in_ch and H % 2 == 0 and W % 2 == 0
    Hh, Wh = H // 2, W // 2
    M = Hh * Wh
    g = growth_rate
    c_final = in_ch + num_conv * g

    x_flat = x_nchw.reshape(N, C, H * W).astype(jnp.float32)  # free reshape

    inputs = [x_flat, consts["pool"], consts["shift"],
              params["wtd_t"], params["btd"]]
    in_specs = [
        pl.BlockSpec((1, C, H * W), lambda n: (n, 0, 0)),
        pl.BlockSpec((H * W, M), lambda n: (0, 0)),
        pl.BlockSpec((9, M, M), lambda n: (0, 0, 0)),
        pl.BlockSpec((C, C), lambda n: (0, 0)),
        pl.BlockSpec((C, 1), lambda n: (0, 0)),
    ]
    for i in range(num_conv):
        lp = params["db"][i]
        ci = in_ch + i * g
        for name, shape in (("s1", (ci, 1)), ("sh1", (ci, 1)),
                            ("w1t", (4 * g, ci)), ("b1", (4 * g, 1)),
                            ("w2s", (9 * g, 4 * g)), ("b2", (g, 1))):
            inputs.append(lp[name])
            in_specs.append(pl.BlockSpec(shape, lambda n: (0, 0)))

    kernel = functools.partial(_encoder_fused_kernel, num_conv=num_conv,
                               growth_rate=g)
    out = pl.pallas_call(
        kernel,
        out_shape=jax.ShapeDtypeStruct((N, c_final, M), jnp.float32),
        grid=(N,),
        in_specs=in_specs,
        out_specs=pl.BlockSpec((1, c_final, M), lambda n: (n, 0, 0)),
        compiler_params=pltpu.CompilerParams(
            dimension_semantics=("parallel",),
            vmem_limit_bytes=32 * 1024 * 1024),
    )(*inputs)
    return out.reshape(N, c_final, Hh, Wh)                   # already NCHW


# ----------------------------------------------------------------------------
# Pure-JAX f32 reference (inference semantics), for a tolerance check.
# ----------------------------------------------------------------------------
def _bn_infer(x, p):
    return (x - p["mean"]) * jax.lax.rsqrt(p["var"] + BN_EPS) * p["gamma"] \
        + p["beta"]


def reference_forward(x_nchw, raw, *, num_conv, growth_rate):
    x = jnp.transpose(x_nchw, (0, 2, 3, 1)).astype(jnp.float32)      # NHWC
    t = _bn_infer(x, raw["td"]["bn"])
    t = jnp.einsum("nhwc,cd->nhwd", t, raw["td"]["w"]) + raw["td"]["b"]
    N, H, W, C = t.shape
    feat = t.reshape(N, H // 2, 2, W // 2, 2, C).mean(axis=(2, 4))
    for i in range(num_conv):
        lp = raw["db"][i]
        a = jnp.maximum(_bn_infer(feat, lp["bn1"]), 0.0)
        z = jnp.einsum("nhwc,cd->nhwd", a, lp["w1"]) + lp["b1"]
        z = jnp.maximum(_bn_infer(z, lp["bn2"]), 0.0)
        zp = jnp.pad(z, ((0, 0), (1, 1), (1, 1), (0, 0)))
        h, w = feat.shape[1], feat.shape[2]
        acc = jnp.zeros(feat.shape[:3] + (growth_rate,), jnp.float32) + lp["b2"]
        for dy in range(3):
            for dx in range(3):
                acc = acc + jnp.einsum("nhwc,cd->nhwd",
                                       zp[:, dy:dy + h, dx:dx + w, :],
                                       lp["w2"][dy, dx])
        feat = jnp.concatenate([feat, acc], axis=-1)
    return jnp.transpose(feat, (0, 3, 1, 2))                          # NCHW


# ----------------------------------------------------------------------------
if __name__ == "__main__":
    in_ch, num_conv, growth_rate, drop_rate = 8, 2, 8, 0.2   # dropout: identity
    N, H, W = 2, 16, 16

    key = jax.random.PRNGKey(0)
    kx, kp = jax.random.split(key)
    x = jax.random.normal(kx, (N, in_ch, H, W), jnp.float32)          # NCHW
    raw = make_params(kp, in_ch, num_conv, growth_rate)
    params = fold_params(raw, num_conv=num_conv, growth_rate=growth_rate)
    consts = make_spatial_operators(H, W)

    fwd = jax.jit(functools.partial(encoder_layer_forward, in_ch=in_ch,
                                    num_conv=num_conv,
                                    growth_rate=growth_rate))
    out = jax.block_until_ready(fwd(x, params, consts))

    expected_shape = (N, in_ch + num_conv * growth_rate, H // 2, W // 2)
    assert out.shape == expected_shape, (out.shape, expected_shape)
    assert bool(jnp.all(jnp.isfinite(out)))

    ref = reference_forward(x, raw, num_conv=num_conv,
                            growth_rate=growth_rate)
    max_err = float(jnp.max(jnp.abs(out - ref)))
    assert max_err < 1e-1, f"max abs error vs f32 reference: {max_err}"
    print("KERNEL_OK")
</pallas_src>

<mosaic_0001>
module attributes {stable_mosaic.version = 11 : i64} {
  func.func @_encoder_fused_kernel(%arg0: i32, %arg1: memref<1x8x256xf32, #tpu.memory_space<vmem>>, %arg2: memref<256x64xbf16, #tpu.memory_space<vmem>>, %arg3: memref<9x64x64xbf16, #tpu.memory_space<vmem>>, %arg4: memref<8x8xbf16, #tpu.memory_space<vmem>>, %arg5: memref<8x1xf32, #tpu.memory_space<vmem>>, %arg6: memref<8x1xf32, #tpu.memory_space<vmem>>, %arg7: memref<8x1xf32, #tpu.memory_space<vmem>>, %arg8: memref<32x8xbf16, #tpu.memory_space<vmem>>, %arg9: memref<32x1xf32, #tpu.memory_space<vmem>>, %arg10: memref<72x32xbf16, #tpu.memory_space<vmem>>, %arg11: memref<8x1xf32, #tpu.memory_space<vmem>>, %arg12: memref<16x1xf32, #tpu.memory_space<vmem>>, %arg13: memref<16x1xf32, #tpu.memory_space<vmem>>, %arg14: memref<32x16xbf16, #tpu.memory_space<vmem>>, %arg15: memref<32x1xf32, #tpu.memory_space<vmem>>, %arg16: memref<72x32xbf16, #tpu.memory_space<vmem>>, %arg17: memref<8x1xf32, #tpu.memory_space<vmem>>, %arg18: memref<1x24x64xf32, #tpu.memory_space<vmem>>) attributes {dimension_semantics = [#tpu.dimension_semantics<parallel>], iteration_bounds = array<i64: 2>, scalar_prefetch = 0 : i64, scratch_operands = 0 : i64, tpu.core_type = #tpu.core_type<tc>, window_params = [{transform_indices = @transform_0, window_bounds = array<i64: 1, 8, 256>}, {pipeline_mode = #tpu.pipeline_mode<synchronous>, transform_indices = @transform_1, window_bounds = array<i64: 256, 64>}, {pipeline_mode = #tpu.pipeline_mode<synchronous>, transform_indices = @transform_2, window_bounds = array<i64: 9, 64, 64>}, {pipeline_mode = #tpu.pipeline_mode<synchronous>, transform_indices = @transform_3, window_bounds = array<i64: 8, 8>}, {pipeline_mode = #tpu.pipeline_mode<synchronous>, transform_indices = @transform_4, window_bounds = array<i64: 8, 1>}, {pipeline_mode = #tpu.pipeline_mode<synchronous>, transform_indices = @transform_5, window_bounds = array<i64: 8, 1>}, {pipeline_mode = #tpu.pipeline_mode<synchronous>, transform_indices = @transform_6, window_bounds = array<i64: 8, 1>}, {pipeline_mode = #tpu.pipeline_mode<synchronous>, transform_indices = @transform_7, window_bounds = array<i64: 32, 8>}, {pipeline_mode = #tpu.pipeline_mode<synchronous>, transform_indices = @transform_8, window_bounds = array<i64: 32, 1>}, {pipeline_mode = #tpu.pipeline_mode<synchronous>, transform_indices = @transform_9, window_bounds = array<i64: 72, 32>}, {pipeline_mode = #tpu.pipeline_mode<synchronous>, transform_indices = @transform_10, window_bounds = array<i64: 8, 1>}, {pipeline_mode = #tpu.pipeline_mode<synchronous>, transform_indices = @transform_11, window_bounds = array<i64: 16, 1>}, {pipeline_mode = #tpu.pipeline_mode<synchronous>, transform_indices = @transform_12, window_bounds = array<i64: 16, 1>}, {pipeline_mode = #tpu.pipeline_mode<synchronous>, transform_indices = @transform_13, window_bounds = array<i64: 32, 16>}, {pipeline_mode = #tpu.pipeline_mode<synchronous>, transform_indices = @transform_14, window_bounds = array<i64: 32, 1>}, {pipeline_mode = #tpu.pipeline_mode<synchronous>, transform_indices = @transform_15, window_bounds = array<i64: 72, 32>}, {pipeline_mode = #tpu.pipeline_mode<synchronous>, transform_indices = @transform_16, window_bounds = array<i64: 8, 1>}, {transform_indices = @transform_17, window_bounds = array<i64: 1, 24, 64>}]} {
    %c0 = arith.constant 0 : index
    %c0_0 = arith.constant 0 : index
    %c0_1 = arith.constant 0 : index
    %0 = vector.load %arg1[%c0, %c0_0, %c0_1] : memref<1x8x256xf32, #tpu.memory_space<vmem>>, vector<1x8x256xf32>
    %1 = vector.shape_cast %0 : vector<1x8x256xf32> to vector<8x256xf32>
    %2 = arith.truncf %1 : vector<8x256xf32> to vector<8x256xbf16>
    %c0_2 = arith.constant 0 : index
    %c0_3 = arith.constant 0 : index
    %3 = vector.load %arg2[%c0_2, %c0_3] : memref<256x64xbf16, #tpu.memory_space<vmem>>, vector<256x64xbf16>
    %cst = arith.constant dense<0.000000e+00> : vector<8x64xf32>
    %4 = tpu.matmul %2, %3, %cst {dimension_numbers = #tpu.dot_dimension_numbers<[1], [0], [0], [1], [0, 0, 1, 1], [], []>} : vector<8x256xbf16>, vector<256x64xbf16>, vector<8x64xf32> -> vector<8x64xf32>
    %c0_4 = arith.constant 0 : index
    %c0_5 = arith.constant 0 : index
    %5 = vector.load %arg4[%c0_4, %c0_5] : memref<8x8xbf16, #tpu.memory_space<vmem>>, vector<8x8xbf16>
    %6 = arith.truncf %4 : vector<8x64xf32> to vector<8x64xbf16>
    %cst_6 = arith.constant dense<0.000000e+00> : vector<8x64xf32>
    %7 = tpu.matmul %5, %6, %cst_6 {dimension_numbers = #tpu.dot_dimension_numbers<[1], [0], [0], [1], [0, 0, 1, 1], [], []>} : vector<8x8xbf16>, vector<8x64xbf16>, vector<8x64xf32> -> vector<8x64xf32>
    %c0_7 = arith.constant 0 : index
    %c0_8 = arith.constant 0 : index
    %8 = vector.load %arg5[%c0_7, %c0_8] : memref<8x1xf32, #tpu.memory_space<vmem>>, vector<8x1xf32>
    %9 = vector.broadcast %8 : vector<8x1xf32> to vector<8x64xf32>
    %10 = arith.addf %7, %9 : vector<8x64xf32>
    %c0_9 = arith.constant 0 : index
    %c0_10 = arith.constant 0 : index
    %11 = vector.load %arg6[%c0_9, %c0_10] : memref<8x1xf32, #tpu.memory_space<vmem>>, vector<8x1xf32>
    %12 = vector.broadcast %11 : vector<8x1xf32> to vector<8x64xf32>
    %13 = arith.mulf %10, %12 : vector<8x64xf32>
    %c0_11 = arith.constant 0 : index
    %c0_12 = arith.constant 0 : index
    %14 = vector.load %arg7[%c0_11, %c0_12] : memref<8x1xf32, #tpu.memory_space<vmem>>, vector<8x1xf32>
    %15 = vector.broadcast %14 : vector<8x1xf32> to vector<8x64xf32>
    %16 = arith.addf %13, %15 : vector<8x64xf32>
    %cst_13 = arith.constant 0.000000e+00 : f32
    %17 = vector.broadcast %cst_13 : f32 to vector<8x64xf32>
    %18 = arith.maximumf %16, %17 : vector<8x64xf32>
    %c0_14 = arith.constant 0 : index
    %c0_15 = arith.constant 0 : index
    %19 = vector.load %arg8[%c0_14, %c0_15] : memref<32x8xbf16, #tpu.memory_space<vmem>>, vector<32x8xbf16>
    %20 = arith.truncf %18 : vector<8x64xf32> to vector<8x64xbf16>
    %cst_16 = arith.constant dense<0.000000e+00> : vector<32x64xf32>
    %21 = tpu.matmul %19, %20, %cst_16 {dimension_numbers = #tpu.dot_dimension_numbers<[1], [0], [0], [1], [0, 0, 1, 1], [], []>} : vector<32x8xbf16>, vector<8x64xbf16>, vector<32x64xf32> -> vector<32x64xf32>
    %c0_17 = arith.constant 0 : index
    %c0_18 = arith.constant 0 : index
    %22 = vector.load %arg9[%c0_17, %c0_18] : memref<32x1xf32, #tpu.memory_space<vmem>>, vector<32x1xf32>
    %23 = vector.broadcast %22 : vector<32x1xf32> to vector<32x64xf32>
    %24 = arith.addf %21, %23 : vector<32x64xf32>
    %cst_19 = arith.constant 0.000000e+00 : f32
    %25 = vector.broadcast %cst_19 : f32 to vector<32x64xf32>
    %26 = arith.maximumf %24, %25 : vector<32x64xf32>
    %c0_20 = arith.constant 0 : index
    %c0_21 = arith.constant 0 : index
    %27 = vector.load %arg10[%c0_20, %c0_21] : memref<72x32xbf16, #tpu.memory_space<vmem>>, vector<72x32xbf16>
    %28 = arith.truncf %26 : vector<32x64xf32> to vector<32x64xbf16>
    %cst_22 = arith.constant dense<0.000000e+00> : vector<72x64xf32>
    %29 = tpu.matmul %27, %28, %cst_22 {dimension_numbers = #tpu.dot_dimension_numbers<[1], [0], [0], [1], [0, 0, 1, 1], [], []>} : vector<72x32xbf16>, vector<32x64xbf16>, vector<72x64xf32> -> vector<72x64xf32>
    %cst_23 = arith.constant 0.000000e+00 : f32
    %30 = vector.broadcast %cst_23 : f32 to vector<8x64xf32>
    %31 = vector.extract_strided_slice %29 {offsets = [0, 0], sizes = [8, 64], strides = [1, 1]} : vector<72x64xf32> to vector<8x64xf32>
    %32 = arith.truncf %31 : vector<8x64xf32> to vector<8x64xbf16>
    %c0_24 = arith.constant 0 : index
    %c0_25 = arith.constant 0 : index
    %c0_26 = arith.constant 0 : index
    %33 = vector.load %arg3[%c0_24, %c0_25, %c0_26] : memref<9x64x64xbf16, #tpu.memory_space<vmem>>, vector<1x64x64xbf16>
    %34 = vector.shape_cast %33 : vector<1x64x64xbf16> to vector<64x64xbf16>
    %cst_27 = arith.constant dense<0.000000e+00> : vector<8x64xf32>
    %35 = tpu.matmul %32, %34, %cst_27 {dimension_numbers = #tpu.dot_dimension_numbers<[1], [0], [0], [1], [0, 0, 1, 1], [], []>} : vector<8x64xbf16>, vector<64x64xbf16>, vector<8x64xf32> -> vector<8x64xf32>
    %36 = arith.addf %30, %35 : vector<8x64xf32>
    %37 = vector.extract_strided_slice %29 {offsets = [8, 0], sizes = [8, 64], strides = [1, 1]} : vector<72x64xf32> to vector<8x64xf32>
    %38 = arith.truncf %37 : vector<8x64xf32> to vector<8x64xbf16>
    %c1 = arith.constant 1 : index
    %c0_28 = arith.constant 0 : index
    %c0_29 = arith.constant 0 : index
    %39 = vector.load %arg3[%c1, %c0_28, %c0_29] : memref<9x64x64xbf16, #tpu.memory_space<vmem>>, vector<1x64x64xbf16>
    %40 = vector.shape_cast %39 : vector<1x64x64xbf16> to vector<64x64xbf16>
    %cst_30 = arith.constant dense<0.000000e+00> : vector<8x64xf32>
    %41 = tpu.matmul %38, %40, %cst_30 {dimension_numbers = #tpu.dot_dimension_numbers<[1], [0], [0], [1], [0, 0, 1, 1], [], []>} : vector<8x64xbf16>, vector<64x64xbf16>, vector<8x64xf32> -> vector<8x64xf32>
    %42 = arith.addf %36, %41 : vector<8x64xf32>
    %43 = vector.extract_strided_slice %29 {offsets = [16, 0], sizes = [8, 64], strides = [1, 1]} : vector<72x64xf32> to vector<8x64xf32>
    %44 = arith.truncf %43 : vector<8x64xf32> to vector<8x64xbf16>
    %c2 = arith.constant 2 : index
    %c0_31 = arith.constant 0 : index
    %c0_32 = arith.constant 0 : index
    %45 = vector.load %arg3[%c2, %c0_31, %c0_32] : memref<9x64x64xbf16, #tpu.memory_space<vmem>>, vector<1x64x64xbf16>
    %46 = vector.shape_cast %45 : vector<1x64x64xbf16> to vector<64x64xbf16>
    %cst_33 = arith.constant dense<0.000000e+00> : vector<8x64xf32>
    %47 = tpu.matmul %44, %46, %cst_33 {dimension_numbers = #tpu.dot_dimension_numbers<[1], [0], [0], [1], [0, 0, 1, 1], [], []>} : vector<8x64xbf16>, vector<64x64xbf16>, vector<8x64xf32> -> vector<8x64xf32>
    %48 = arith.addf %42, %47 : vector<8x64xf32>
    %49 = vector.extract_strided_slice %29 {offsets = [24, 0], sizes = [8, 64], strides = [1, 1]} : vector<72x64xf32> to vector<8x64xf32>
    %50 = arith.truncf %49 : vector<8x64xf32> to vector<8x64xbf16>
    %c3 = arith.constant 3 : index
    %c0_34 = arith.constant 0 : index
    %c0_35 = arith.constant 0 : index
    %51 = vector.load %arg3[%c3, %c0_34, %c0_35] : memref<9x64x64xbf16, #tpu.memory_space<vmem>>, vector<1x64x64xbf16>
    %52 = vector.shape_cast %51 : vector<1x64x64xbf16> to vector<64x64xbf16>
    %cst_36 = arith.constant dense<0.000000e+00> : vector<8x64xf32>
    %53 = tpu.matmul %50, %52, %cst_36 {dimension_numbers = #tpu.dot_dimension_numbers<[1], [0], [0], [1], [0, 0, 1, 1], [], []>} : vector<8x64xbf16>, vector<64x64xbf16>, vector<8x64xf32> -> vector<8x64xf32>
    %54 = arith.addf %48, %53 : vector<8x64xf32>
    %55 = vector.extract_strided_slice %29 {offsets = [32, 0], sizes = [8, 64], strides = [1, 1]} : vector<72x64xf32> to vector<8x64xf32>
    %56 = arith.truncf %55 : vector<8x64xf32> to vector<8x64xbf16>
    %c4 = arith.constant 4 : index
    %c0_37 = arith.constant 0 : index
    %c0_38 = arith.constant 0 : index
    %57 = vector.load %arg3[%c4, %c0_37, %c0_38] : memref<9x64x64xbf16, #tpu.memory_space<vmem>>, vector<1x64x64xbf16>
    %58 = vector.shape_cast %57 : vector<1x64x64xbf16> to vector<64x64xbf16>
    %cst_39 = arith.constant dense<0.000000e+00> : vector<8x64xf32>
    %59 = tpu.matmul %56, %58, %cst_39 {dimension_numbers = #tpu.dot_dimension_numbers<[1], [0], [0], [1], [0, 0, 1, 1], [], []>} : vector<8x64xbf16>, vector<64x64xbf16>, vector<8x64xf32> -> vector<8x64xf32>
    %60 = arith.addf %54, %59 : vector<8x64xf32>
    %61 = vector.extract_strided_slice %29 {offsets = [40, 0], sizes = [8, 64], strides = [1, 1]} : vector<72x64xf32> to vector<8x64xf32>
    %62 = arith.truncf %61 : vector<8x64xf32> to vector<8x64xbf16>
    %c5 = arith.constant 5 : index
    %c0_40 = arith.constant 0 : index
    %c0_41 = arith.constant 0 : index
    %63 = vector.load %arg3[%c5, %c0_40, %c0_41] : memref<9x64x64xbf16, #tpu.memory_space<vmem>>, vector<1x64x64xbf16>
    %64 = vector.shape_cast %63 : vector<1x64x64xbf16> to vector<64x64xbf16>
    %cst_42 = arith.constant dense<0.000000e+00> : vector<8x64xf32>
    %65 = tpu.matmul %62, %64, %cst_42 {dimension_numbers = #tpu.dot_dimension_numbers<[1], [0], [0], [1], [0, 0, 1, 1], [], []>} : vector<8x64xbf16>, vector<64x64xbf16>, vector<8x64xf32> -> vector<8x64xf32>
    %66 = arith.addf %60, %65 : vector<8x64xf32>
    %67 = vector.extract_strided_slice %29 {offsets = [48, 0], sizes = [8, 64], strides = [1, 1]} : vector<72x64xf32> to vector<8x64xf32>
    %68 = arith.truncf %67 : vector<8x64xf32> to vector<8x64xbf16>
    %c6 = arith.constant 6 : index
    %c0_43 = arith.constant 0 : index
    %c0_44 = arith.constant 0 : index
    %69 = vector.load %arg3[%c6, %c0_43, %c0_44] : memref<9x64x64xbf16, #tpu.memory_space<vmem>>, vector<1x64x64xbf16>
    %70 = vector.shape_cast %69 : vector<1x64x64xbf16> to vector<64x64xbf16>
    %cst_45 = arith.constant dense<0.000000e+00> : vector<8x64xf32>
    %71 = tpu.matmul %68, %70, %cst_45 {dimension_numbers = #tpu.dot_dimension_numbers<[1], [0], [0], [1], [0, 0, 1, 1], [], []>} : vector<8x64xbf16>, vector<64x64xbf16>, vector<8x64xf32> -> vector<8x64xf32>
    %72 = arith.addf %66, %71 : vector<8x64xf32>
    %73 = vector.extract_strided_slice %29 {offsets = [56, 0], sizes = [8, 64], strides = [1, 1]} : vector<72x64xf32> to vector<8x64xf32>
    %74 = arith.truncf %73 : vector<8x64xf32> to vector<8x64xbf16>
    %c7 = arith.constant 7 : index
    %c0_46 = arith.constant 0 : index
    %c0_47 = arith.constant 0 : index
    %75 = vector.load %arg3[%c7, %c0_46, %c0_47] : memref<9x64x64xbf16, #tpu.memory_space<vmem>>, vector<1x64x64xbf16>
    %76 = vector.shape_cast %75 : vector<1x64x64xbf16> to vector<64x64xbf16>
    %cst_48 = arith.constant dense<0.000000e+00> : vector<8x64xf32>
    %77 = tpu.matmul %74, %76, %cst_48 {dimension_numbers = #tpu.dot_dimension_numbers<[1], [0], [0], [1], [0, 0, 1, 1], [], []>} : vector<8x64xbf16>, vector<64x64xbf16>, vector<8x64xf32> -> vector<8x64xf32>
    %78 = arith.addf %72, %77 : vector<8x64xf32>
    %79 = vector.extract_strided_slice %29 {offsets = [64, 0], sizes = [8, 64], strides = [1, 1]} : vector<72x64xf32> to vector<8x64xf32>
    %80 = arith.truncf %79 : vector<8x64xf32> to vector<8x64xbf16>
    %c8 = arith.constant 8 : index
    %c0_49 = arith.constant 0 : index
    %c0_50 = arith.constant 0 : index
    %81 = vector.load %arg3[%c8, %c0_49, %c0_50] : memref<9x64x64xbf16, #tpu.memory_space<vmem>>, vector<1x64x64xbf16>
    %82 = vector.shape_cast %81 : vector<1x64x64xbf16> to vector<64x64xbf16>
    %cst_51 = arith.constant dense<0.000000e+00> : vector<8x64xf32>
    %83 = tpu.matmul %80, %82, %cst_51 {dimension_numbers = #tpu.dot_dimension_numbers<[1], [0], [0], [1], [0, 0, 1, 1], [], []>} : vector<8x64xbf16>, vector<64x64xbf16>, vector<8x64xf32> -> vector<8x64xf32>
    %84 = arith.addf %78, %83 : vector<8x64xf32>
    %c0_52 = arith.constant 0 : index
    %c0_53 = arith.constant 0 : index
    %85 = vector.load %arg11[%c0_52, %c0_53] : memref<8x1xf32, #tpu.memory_space<vmem>>, vector<8x1xf32>
    %86 = vector.broadcast %85 : vector<8x1xf32> to vector<8x64xf32>
    %87 = arith.addf %84, %86 : vector<8x64xf32>
    %88 = tpu.concatenate %10, %87 in 0 : vector<8x64xf32>, vector<8x64xf32> -> vector<16x64xf32>
    %c0_54 = arith.constant 0 : index
    %c0_55 = arith.constant 0 : index
    %89 = vector.load %arg12[%c0_54, %c0_55] : memref<16x1xf32, #tpu.memory_space<vmem>>, vector<16x1xf32>
    %90 = vector.broadcast %89 : vector<16x1xf32> to vector<16x64xf32>
    %91 = arith.mulf %88, %90 : vector<16x64xf32>
    %c0_56 = arith.constant 0 : index
    %c0_57 = arith.constant 0 : index
    %92 = vector.load %arg13[%c0_56, %c0_57] : memref<16x1xf32, #tpu.memory_space<vmem>>, vector<16x1xf32>
    %93 = vector.broadcast %92 : vector<16x1xf32> to vector<16x64xf32>
    %94 = arith.addf %91, %93 : vector<16x64xf32>
    %cst_58 = arith.constant 0.000000e+00 : f32
    %95 = vector.broadcast %cst_58 : f32 to vector<16x64xf32>
    %96 = arith.maximumf %94, %95 : vector<16x64xf32>
    %c0_59 = arith.constant 0 : index
    %c0_60 = arith.constant 0 : index
    %97 = vector.load %arg14[%c0_59, %c0_60] : memref<32x16xbf16, #tpu.memory_space<vmem>>, vector<32x16xbf16>
    %98 = arith.truncf %96 : vector<16x64xf32> to vector<16x64xbf16>
    %cst_61 = arith.constant dense<0.000000e+00> : vector<32x64xf32>
    %99 = tpu.matmul %97, %98, %cst_61 {dimension_numbers = #tpu.dot_dimension_numbers<[1], [0], [0], [1], [0, 0, 1, 1], [], []>} : vector<32x16xbf16>, vector<16x64xbf16>, vector<32x64xf32> -> vector<32x64xf32>
    %c0_62 = arith.constant 0 : index
    %c0_63 = arith.constant 0 : index
    %100 = vector.load %arg15[%c0_62, %c0_63] : memref<32x1xf32, #tpu.memory_space<vmem>>, vector<32x1xf32>
    %101 = vector.broadcast %100 : vector<32x1xf32> to vector<32x64xf32>
    %102 = arith.addf %99, %101 : vector<32x64xf32>
    %cst_64 = arith.constant 0.000000e+00 : f32
    %103 = vector.broadcast %cst_64 : f32 to vector<32x64xf32>
    %104 = arith.maximumf %102, %103 : vector<32x64xf32>
    %c0_65 = arith.constant 0 : index
    %c0_66 = arith.constant 0 : index
    %105 = vector.load %arg16[%c0_65, %c0_66] : memref<72x32xbf16, #tpu.memory_space<vmem>>, vector<72x32xbf16>
    %106 = arith.truncf %104 : vector<32x64xf32> to vector<32x64xbf16>
    %cst_67 = arith.constant dense<0.000000e+00> : vector<72x64xf32>
    %107 = tpu.matmul %105, %106, %cst_67 {dimension_numbers = #tpu.dot_dimension_numbers<[1], [0], [0], [1], [0, 0, 1, 1], [], []>} : vector<72x32xbf16>, vector<32x64xbf16>, vector<72x64xf32> -> vector<72x64xf32>
    %cst_68 = arith.constant 0.000000e+00 : f32
    %108 = vector.broadcast %cst_68 : f32 to vector<8x64xf32>
    %109 = vector.extract_strided_slice %107 {offsets = [0, 0], sizes = [8, 64], strides = [1, 1]} : vector<72x64xf32> to vector<8x64xf32>
    %110 = arith.truncf %109 : vector<8x64xf32> to vector<8x64xbf16>
    %c0_69 = arith.constant 0 : index
    %c0_70 = arith.constant 0 : index
    %c0_71 = arith.constant 0 : index
    %111 = vector.load %arg3[%c0_69, %c0_70, %c0_71] : memref<9x64x64xbf16, #tpu.memory_space<vmem>>, vector<1x64x64xbf16>
    %112 = vector.shape_cast %111 : vector<1x64x64xbf16> to vector<64x64xbf16>
    %cst_72 = arith.constant dense<0.000000e+00> : vector<8x64xf32>
    %113 = tpu.matmul %110, %112, %cst_72 {dimension_numbers = #tpu.dot_dimension_numbers<[1], [0], [0], [1], [0, 0, 1, 1], [], []>} : vector<8x64xbf16>, vector<64x64xbf16>, vector<8x64xf32> -> vector<8x64xf32>
    %114 = arith.addf %108, %113 : vector<8x64xf32>
    %115 = vector.extract_strided_slice %107 {offsets = [8, 0], sizes = [8, 64], strides = [1, 1]} : vector<72x64xf32> to vector<8x64xf32>
    %116 = arith.truncf %115 : vector<8x64xf32> to vector<8x64xbf16>
    %c1_73 = arith.constant 1 : index
    %c0_74 = arith.constant 0 : index
    %c0_75 = arith.constant 0 : index
    %117 = vector.load %arg3[%c1_73, %c0_74, %c0_75] : memref<9x64x64xbf16, #tpu.memory_space<vmem>>, vector<1x64x64xbf16>
    %118 = vector.shape_cast %117 : vector<1x64x64xbf16> to vector<64x64xbf16>
    %cst_76 = arith.constant dense<0.000000e+00> : vector<8x64xf32>
    %119 = tpu.matmul %116, %118, %cst_76 {dimension_numbers = #tpu.dot_dimension_numbers<[1], [0], [0], [1], [0, 0, 1, 1], [], []>} : vector<8x64xbf16>, vector<64x64xbf16>, vector<8x64xf32> -> vector<8x64xf32>
    %120 = arith.addf %114, %119 : vector<8x64xf32>
    %121 = vector.extract_strided_slice %107 {offsets = [16, 0], sizes = [8, 64], strides = [1, 1]} : vector<72x64xf32> to vector<8x64xf32>
    %122 = arith.truncf %121 : vector<8x64xf32> to vector<8x64xbf16>
    %c2_77 = arith.constant 2 : index
    %c0_78 = arith.constant 0 : index
    %c0_79 = arith.constant 0 : index
    %123 = vector.load %arg3[%c2_77, %c0_78, %c0_79] : memref<9x64x64xbf16, #tpu.memory_space<vmem>>, vector<1x64x64xbf16>
    %124 = vector.shape_cast %123 : vector<1x64x64xbf16> to vector<64x64xbf16>
    %cst_80 = arith.constant dense<0.000000e+00> : vector<8x64xf32>
    %125 = tpu.matmul %122, %124, %cst_80 {dimension_numbers = #tpu.dot_dimension_numbers<[1], [0], [0], [1], [0, 0, 1, 1], [], []>} : vector<8x64xbf16>, vector<64x64xbf16>, vector<8x64xf32> -> vector<8x64xf32>
    %126 = arith.addf %120, %125 : vector<8x64xf32>
    %127 = vector.extract_strided_slice %107 {offsets = [24, 0], sizes = [8, 64], strides = [1, 1]} : vector<72x64xf32> to vector<8x64xf32>
    %128 = arith.truncf %127 : vector<8x64xf32> to vector<8x64xbf16>
    %c3_81 = arith.constant 3 : index
    %c0_82 = arith.constant 0 : index
    %c0_83 = arith.constant 0 : index
    %129 = vector.load %arg3[%c3_81, %c0_82, %c0_83] : memref<9x64x64xbf16, #tpu.memory_space<vmem>>, vector<1x64x64xbf16>
    %130 = vector.shape_cast %129 : vector<1x64x64xbf16> to vector<64x64xbf16>
    %cst_84 = arith.constant dense<0.000000e+00> : vector<8x64xf32>
    %131 = tpu.matmul %128, %130, %cst_84 {dimension_numbers = #tpu.dot_dimension_numbers<[1], [0], [0], [1], [0, 0, 1, 1], [], []>} : vector<8x64xbf16>, vector<64x64xbf16>, vector<8x64xf32> -> vector<8x64xf32>
    %132 = arith.addf %126, %131 : vector<8x64xf32>
    %133 = vector.extract_strided_slice %107 {offsets = [32, 0], sizes = [8, 64], strides = [1, 1]} : vector<72x64xf32> to vector<8x64xf32>
    %134 = arith.truncf %133 : vector<8x64xf32> to vector<8x64xbf16>
    %c4_85 = arith.constant 4 : index
    %c0_86 = arith.constant 0 : index
    %c0_87 = arith.constant 0 : index
    %135 = vector.load %arg3[%c4_85, %c0_86, %c0_87] : memref<9x64x64xbf16, #tpu.memory_space<vmem>>, vector<1x64x64xbf16>
    %136 = vector.shape_cast %135 : vector<1x64x64xbf16> to vector<64x64xbf16>
    %cst_88 = arith.constant dense<0.000000e+00> : vector<8x64xf32>
    %137 = tpu.matmul %134, %136, %cst_88 {dimension_numbers = #tpu.dot_dimension_numbers<[1], [0], [0], [1], [0, 0, 1, 1], [], []>} : vector<8x64xbf16>, vector<64x64xbf16>, vector<8x64xf32> -> vector<8x64xf32>
    %138 = arith.addf %132, %137 : vector<8x64xf32>
    %139 = vector.extract_strided_slice %107 {offsets = [40, 0], sizes = [8, 64], strides = [1, 1]} : vector<72x64xf32> to vector<8x64xf32>
    %140 = arith.truncf %139 : vector<8x64xf32> to vector<8x64xbf16>
    %c5_89 = arith.constant 5 : index
    %c0_90 = arith.constant 0 : index
    %c0_91 = arith.constant 0 : index
    %141 = vector.load %arg3[%c5_89, %c0_90, %c0_91] : memref<9x64x64xbf16, #tpu.memory_space<vmem>>, vector<1x64x64xbf16>
    %142 = vector.shape_cast %141 : vector<1x64x64xbf16> to vector<64x64xbf16>
    %cst_92 = arith.constant dense<0.000000e+00> : vector<8x64xf32>
    %143 = tpu.matmul %140, %142, %cst_92 {dimension_numbers = #tpu.dot_dimension_numbers<[1], [0], [0], [1], [0, 0, 1, 1], [], []>} : vector<8x64xbf16>, vector<64x64xbf16>, vector<8x64xf32> -> vector<8x64xf32>
    %144 = arith.addf %138, %143 : vector<8x64xf32>
    %145 = vector.extract_strided_slice %107 {offsets = [48, 0], sizes = [8, 64], strides = [1, 1]} : vector<72x64xf32> to vector<8x64xf32>
    %146 = arith.truncf %145 : vector<8x64xf32> to vector<8x64xbf16>
    %c6_93 = arith.constant 6 : index
    %c0_94 = arith.constant 0 : index
    %c0_95 = arith.constant 0 : index
    %147 = vector.load %arg3[%c6_93, %c0_94, %c0_95] : memref<9x64x64xbf16, #tpu.memory_space<vmem>>, vector<1x64x64xbf16>
    %148 = vector.shape_cast %147 : vector<1x64x64xbf16> to vector<64x64xbf16>
    %cst_96 = arith.constant dense<0.000000e+00> : vector<8x64xf32>
    %149 = tpu.matmul %146, %148, %cst_96 {dimension_numbers = #tpu.dot_dimension_numbers<[1], [0], [0], [1], [0, 0, 1, 1], [], []>} : vector<8x64xbf16>, vector<64x64xbf16>, vector<8x64xf32> -> vector<8x64xf32>
    %150 = arith.addf %144, %149 : vector<8x64xf32>
    %151 = vector.extract_strided_slice %107 {offsets = [56, 0], sizes = [8, 64], strides = [1, 1]} : vector<72x64xf32> to vector<8x64xf32>
    %152 = arith.truncf %151 : vector<8x64xf32> to vector<8x64xbf16>
    %c7_97 = arith.constant 7 : index
    %c0_98 = arith.constant 0 : index
    %c0_99 = arith.constant 0 : index
    %153 = vector.load %arg3[%c7_97, %c0_98, %c0_99] : memref<9x64x64xbf16, #tpu.memory_space<vmem>>, vector<1x64x64xbf16>
    %154 = vector.shape_cast %153 : vector<1x64x64xbf16> to vector<64x64xbf16>
    %cst_100 = arith.constant dense<0.000000e+00> : vector<8x64xf32>
    %155 = tpu.matmul %152, %154, %cst_100 {dimension_numbers = #tpu.dot_dimension_numbers<[1], [0], [0], [1], [0, 0, 1, 1], [], []>} : vector<8x64xbf16>, vector<64x64xbf16>, vector<8x64xf32> -> vector<8x64xf32>
    %156 = arith.addf %150, %155 : vector<8x64xf32>
    %157 = vector.extract_strided_slice %107 {offsets = [64, 0], sizes = [8, 64], strides = [1, 1]} : vector<72x64xf32> to vector<8x64xf32>
    %158 = arith.truncf %157 : vector<8x64xf32> to vector<8x64xbf16>
    %c8_101 = arith.constant 8 : index
    %c0_102 = arith.constant 0 : index
    %c0_103 = arith.constant 0 : index
    %159 = vector.load %arg3[%c8_101, %c0_102, %c0_103] : memref<9x64x64xbf16, #tpu.memory_space<vmem>>, vector<1x64x64xbf16>
    %160 = vector.shape_cast %159 : vector<1x64x64xbf16> to vector<64x64xbf16>
    %cst_104 = arith.constant dense<0.000000e+00> : vector<8x64xf32>
    %161 = tpu.matmul %158, %160, %cst_104 {dimension_numbers = #tpu.dot_dimension_numbers<[1], [0], [0], [1], [0, 0, 1, 1], [], []>} : vector<8x64xbf16>, vector<64x64xbf16>, vector<8x64xf32> -> vector<8x64xf32>
    %162 = arith.addf %156, %161 : vector<8x64xf32>
    %c0_105 = arith.constant 0 : index
    %c0_106 = arith.constant 0 : index
    %163 = vector.load %arg17[%c0_105, %c0_106] : memref<8x1xf32, #tpu.memory_space<vmem>>, vector<8x1xf32>
    %164 = vector.broadcast %163 : vector<8x1xf32> to vector<8x64xf32>
    %165 = arith.addf %162, %164 : vector<8x64xf32>
    %166 = tpu.concatenate %88, %165 in 0 : vector<16x64xf32>, vector<8x64xf32> -> vector<24x64xf32>
    %c0_107 = arith.constant 0 : index
    %c0_108 = arith.constant 0 : index
    %c0_109 = arith.constant 0 : index
    %167 = vector.load %arg18[%c0_107, %c0_108, %c0_109] : memref<1x24x64xf32, #tpu.memory_space<vmem>>, vector<1x24x64xf32>
    %168 = vector.shape_cast %167 : vector<1x24x64xf32> to vector<24x64xf32>
    %169 = vector.shape_cast %166 : vector<24x64xf32> to vector<1x24x64xf32>
    tpu.vector_store %arg18[%c0_107, %c0_108, %c0_109], %169 {strides = array<i32>} : memref<1x24x64xf32, #tpu.memory_space<vmem>>, vector<1x24x64xf32>,
    return
  }
  func.func @transform_0(%arg0: i32) -> (i32, i32, i32) {
    %c0_i32 = arith.constant 0 : i32
    %c0_i32_0 = arith.constant 0 : i32
    %c0_i32_1 = arith.constant 0 : i32
    return %arg0, %c0_i32, %c0_i32_0 : i32, i32, i32
  }
  func.func @transform_1(%arg0: i32) -> (i32, i32) {
    %c0_i32 = arith.constant 0 : i32
    %c0_i32_0 = arith.constant 0 : i32
    %c0_i32_1 = arith.constant 0 : i32
    return %c0_i32, %c0_i32_0 : i32, i32
  }
  func.func @transform_2(%arg0: i32) -> (i32, i32, i32) {
    %c0_i32 = arith.constant 0 : i32
    %c0_i32_0 = arith.constant 0 : i32
    %c0_i32_1 = arith.constant 0 : i32
    %c0_i32_2 = arith.constant 0 : i32
    return %c0_i32, %c0_i32_0, %c0_i32_1 : i32, i32, i32
  }
  func.func @transform_3(%arg0: i32) -> (i32, i32) {
    %c0_i32 = arith.constant 0 : i32
    %c0_i32_0 = arith.constant 0 : i32
    %c0_i32_1 = arith.constant 0 : i32
    return %c0_i32, %c0_i32_0 : i32, i32
  }
  func.func @transform_4(%arg0: i32) -> (i32, i32) {
    %c0_i32 = arith.constant 0 : i32
    %c0_i32_0 = arith.constant 0 : i32
    %c0_i32_1 = arith.constant 0 : i32
    return %c0_i32, %c0_i32_0 : i32, i32
  }
  func.func @transform_5(%arg0: i32) -> (i32, i32) {
    %c0_i32 = arith.constant 0 : i32
    %c0_i32_0 = arith.constant 0 : i32
    %c0_i32_1 = arith.constant 0 : i32
    return %c0_i32, %c0_i32_0 : i32, i32
  }
  func.func @transform_6(%arg0: i32) -> (i32, i32) {
    %c0_i32 = arith.constant 0 : i32
    %c0_i32_0 = arith.constant 0 : i32
    %c0_i32_1 = arith.constant 0 : i32
    return %c0_i32, %c0_i32_0 : i32, i32
  }
  func.func @transform_7(%arg0: i32) -> (i32, i32) {
    %c0_i32 = arith.constant 0 : i32
    %c0_i32_0 = arith.constant 0 : i32
    %c0_i32_1 = arith.constant 0 : i32
    return %c0_i32, %c0_i32_0 : i32, i32
  }
  func.func @transform_8(%arg0: i32) -> (i32, i32) {
    %c0_i32 = arith.constant 0 : i32
    %c0_i32_0 = arith.constant 0 : i32
    %c0_i32_1 = arith.constant 0 : i32
    return %c0_i32, %c0_i32_0 : i32, i32
  }
  func.func @transform_9(%arg0: i32) -> (i32, i32) {
    %c0_i32 = arith.constant 0 : i32
    %c0_i32_0 = arith.constant 0 : i32
    %c0_i32_1 = arith.constant 0 : i32
    return %c0_i32, %c0_i32_0 : i32, i32
  }
  func.func @transform_10(%arg0: i32) -> (i32, i32) {
    %c0_i32 = arith.constant 0 : i32
    %c0_i32_0 = arith.constant 0 : i32
    %c0_i32_1 = arith.constant 0 : i32
    return %c0_i32, %c0_i32_0 : i32, i32
  }
  func.func @transform_11(%arg0: i32) -> (i32, i32) {
    %c0_i32 = arith.constant 0 : i32
    %c0_i32_0 = arith.constant 0 : i32
    %c0_i32_1 = arith.constant 0 : i32
    return %c0_i32, %c0_i32_0 : i32, i32
  }
  func.func @transform_12(%arg0: i32) -> (i32, i32) {
    %c0_i32 = arith.constant 0 : i32
    %c0_i32_0 = arith.constant 0 : i32
    %c0_i32_1 = arith.constant 0 : i32
    return %c0_i32, %c0_i32_0 : i32, i32
  }
  func.func @transform_13(%arg0: i32) -> (i32, i32) {
    %c0_i32 = arith.constant 0 : i32
    %c0_i32_0 = arith.constant 0 : i32
    %c0_i32_1 = arith.constant 0 : i32
    return %c0_i32, %c0_i32_0 : i32, i32
  }
  func.func @transform_14(%arg0: i32) -> (i32, i32) {
    %c0_i32 = arith.constant 0 : i32
    %c0_i32_0 = arith.constant 0 : i32
    %c0_i32_1 = arith.constant 0 : i32
    return %c0_i32, %c0_i32_0 : i32, i32
  }
  func.func @transform_15(%arg0: i32) -> (i32, i32) {
    %c0_i32 = arith.constant 0 : i32
    %c0_i32_0 = arith.constant 0 : i32
    %c0_i32_1 = arith.constant 0 : i32
    return %c0_i32, %c0_i32_0 : i32, i32
  }
  func.func @transform_16(%arg0: i32) -> (i32, i32) {
    %c0_i32 = arith.constant 0 : i32
    %c0_i32_0 = arith.constant 0 : i32
    %c0_i32_1 = arith.constant 0 : i32
    return %c0_i32, %c0_i32_0 : i32, i32
  }
  func.func @transform_17(%arg0: i32) -> (i32, i32, i32) {
    %c0_i32 = arith.constant 0 : i32
    %c0_i32_0 = arith.constant 0 : i32
    %c0_i32_1 = arith.constant 0 : i32
    return %arg0, %c0_i32, %c0_i32_0 : i32, i32, i32
  }
}

</mosaic_0001>

<bundles_post_ra>
// kernel: encoder_layer_forward.1
= control target key start
LH: loop header
LB: loop body
LE: loop exit
PB: predicated region body
PF: predicated region fallthrough
CT: control target
= control target key end

     0   :  { %s2316_s24 = smov 0   ;;  %s2751_s0 = inlined_call_operand.vmem [shape: f32[2,8,256], index: 0, kind: input, shape index: {}]   ;;  %s2752_s1 = inlined_call_operand.vmem [shape: bf16[256,64], index: 1, kind: input, shape index: {}]   ;;  %s2753_s2 = inlined_call_operand.vmem [shape: bf16[9,64,64], index: 2, kind: input, shape index: {}]   ;;  %s2754_s3 = inlined_call_operand.vmem [shape: bf16[8,8], index: 3, kind: input, shape index: {}]   ;;  %s2755_s4 = inlined_call_operand.vmem [shape: f32[8,1], index: 4, kind: input, shape index: {}]   ;;  %s2756_s5 = inlined_call_operand.vmem [shape: f32[8,1], index: 5, kind: input, shape index: {}]   ;;  %s2757_s6 = inlined_call_operand.vmem [shape: f32[8,1], index: 6, kind: input, shape index: {}]   ;;  %s2758_s7 = inlined_call_operand.vmem [shape: bf16[32,8], index: 7, kind: input, shape index: {}]   ;;  %s2759_s8 = inlined_call_operand.vmem [shape: f32[32,1], index: 8, kind: input, shape index: {}]   ;;  %s2760_s9 = inlined_call_operand.vmem [shape: bf16[72,32], index: 9, kind: input, shape index: {}]   ;;  %s2761_s10 = inlined_call_operand.vmem [shape: f32[8,1], index: 10, kind: input, shape index: {}]   ;;  %s2762_s11 = inlined_call_operand.vmem [shape: f32[16,1], index: 11, kind: input, shape index: {}]   ;;  %s2763_s12 = inlined_call_operand.vmem [shape: f32[16,1], index: 12, kind: input, shape index: {}]   ;;  %s2764_s13 = inlined_call_operand.vmem [shape: bf16[32,16], index: 13, kind: input, shape index: {}]   ;;  %s2765_s14 = inlined_call_operand.vmem [shape: f32[32,1], index: 14, kind: input, shape index: {}]   ;;  %s2766_s15 = inlined_call_operand.vmem [shape: bf16[72,32], index: 15, kind: input, shape index: {}]   ;;  %s2767_s16 = inlined_call_operand.vmem [shape: f32[8,1], index: 16, kind: input, shape index: {}]   ;;  %s2768_s17 = inlined_call_operand.vmem [shape: f32[2,24,64], index: 17, kind: output, shape index: {}]  }
   0x1   :  { %2770 = sst [smem:[#allocation2_spill]] %s2751_s0 }
   0x2   :  { %2771 = sst [smem:[#allocation3_spill]] %s2752_s1 }
   0x3   :  { %2772 = sst [smem:[#allocation4_spill]] %s2755_s4 }
   0x4 LB: > { %s1776_s25 = sadd.s32 4294967295, %s2223_s24   ;;  %p1780_p0 = scmp.ge.s32.totalorder %s2223_s24, 1  ;;  %s2223_s24 = sphi %s2316_s24, %s27_s24  }
   0x5   : > { %p487_p1 = scmp.lt.s32.totalorder %s2223_s24, 3 }
   0x7   : > { %p488_p2 = pnand %p1780_p0, %p487_p1 }
   0x8   : > { %s2773_s28 = sld [smem:[#allocation3_spill]] (!%p488_p2)  ;;  %p539_p3 = scmp.lt.s32.totalorder (!%p488_p2), %s1776_s25, 1 }
   0x9   : > { %491 = sbr.rel (%p488_p2) target bundleno = 1330 (0x532), region = 88  ;;  %s2774_s4 = sld [smem:[#allocation4_spill]] (!%p488_p2) }
   0xa   : > { %s2775_s18 = sld [smem:[#allocation2_spill]] (!%p488_p2) }
   0xe   : > { %v2147_v0 = vld [vmem:[%s2773_s28 + $0x38] sm:$0xff]  ;;  %v2146_v2 = vld [vmem:[%s2773_s28 + $0x30] sm:$0xff]  ;;  %v2225_v4 = vmov 0   ;;  %v2145_v6 = vld [vmem:[%s2773_s28 + $0x28] sm:$0xff]  ;;  %s2777_s25 = smov (!%p539_p3, %s1776_s25), 1  ;;  %vm720_vm0 = vcmask 1043456  }
   0xf   : > { %v2155_v1 = vld [vmem:[%s2773_s28 + $0x78] sm:$0xff]  ;;  %682 = vmatpush.bf16.msra.mxu0 %v2147_v0  ;;  %v2154_v3 = vld [vmem:[%s2773_s28 + $0x70] sm:$0xff]  ;;  %2214 = vset.pattern.permute.xlu0 %v2225_v4  ;;  %v710_v5 = vld [vmem:[%s2774_s4] sm:$0xff]  ;;  %s2139_s20 = sshll.u32 %s2777_s25, 4  ;;  %vm716_vm1 = vcmask 64512   ;;  %vm949_vm2 = vcmask 523264  }
  0x10   : > { %695 = vmatpush.bf16.msra.mxu1 %v2155_v1  ;;  %2215 = vset.pattern.permute.xlu1 %v2225_v4  ;;  %v2153_v7 = vld [vmem:[%s2773_s28 + $0x68] sm:$0xff]  ;;  %v744_v8 = vld [vmem:[%s2757_s6] sm:$0xff]  ;;  %v759_v12 = vld [vmem:[%s2759_s8 + $0x10] sm:$0xff]  ;;  %s543_s19 = scalar_lea.vmem %s2775_s18, %s2139_s20  ;;  %vm857_vm3 = vcmask 261120   ;;  %vm1439_vm4 = vcmask 130048  }
  0x11   : > { %2216 = vset.pattern.permute.xlu2 %v2225_v4  ;;  %713 = vperm.xlu0 %2214, %v710_v5   ;;  %v2144_v9 = vld [vmem:[%s2773_s28 + $0x20] sm:$0xff]  ;;  %v2143_v13 = vld [vmem:[%s2773_s28 + $0x18] sm:$0xff]  ;;  %v2142_v15 = vld [vmem:[%s2773_s28 + $0x10] sm:$0xff] }
  0x12   : > { %747 = vperm.xlu1 %2215, %v744_v8   ;;  %v2152_v10 = vld [vmem:[%s2773_s28 + $0x60] sm:$0xff]  ;;  %v2151_v14 = vld [vmem:[%s2773_s28 + $0x58] sm:$0xff]  ;;  %v2150_v16 = vld [vmem:[%s2773_s28 + $0x50] sm:$0xff] }
  0x13   : > { %683 = vmatpush.bf16.msra.mxu0 %v2146_v2  ;;  %v737_v11 = vld [vmem:[%s2756_s5] sm:$0xff]  ;;  %v758_v17 = vld [vmem:[%s2759_s8 + $0x8] sm:$0xff]  ;;  %v1407_v28 = vld [vmem:[%s2765_s14 + $0x10] sm:$0xff] }
  0x14   : > { %696 = vmatpush.bf16.msra.mxu1 %v2154_v3  ;;  %v2141_v18 = vld [vmem:[%s2773_s28 + $0x8] sm:$0xff]  ;;  %v2140_v20 = vld [vmem:[%s2773_s28] sm:$0xff]  ;;  %v760_v30 = vld [vmem:[%s2759_s8 + $0x18] sm:$0xff] }
  0x15   : > { %v2149_v19 = vld [vmem:[%s2773_s28 + $0x48] sm:$0xff]  ;;  %v2148_v21 = vld [vmem:[%s2773_s28 + $0x40] sm:$0xff]  ;;  %778 = vperm.xlu2 %2216, %v760_v30   ;;  %v1408_v33 = vld [vmem:[%s2765_s14 + $0x18] sm:$0xff] }
  0x16   : > { %v550_v22 = vld [vmem:[%s543_s19] sm:$0xff]  ;;  %v551_v23 = vld [vmem:[%s543_s19 + $0x8] sm:$0xff]  ;;  %s2204_s19 = smul.u32 24, %s2777_s25 }
  0x17   : > { %684 = vmatpush.bf16.msra.mxu0 %v2145_v6  ;;  %v552_v24 = vpack.c.bf16 %v550_v22, %v550_v22  ;;  %v553_v25 = vpack.c.bf16 %v551_v23, %v551_v23  ;;  %v1371_v26 = vld [vmem:[%s2762_s11 + $0x8] sm:$0xff]  ;;  %v1363_v27 = vld [vmem:[%s2761_s10] sm:$0xff] }
  0x18   : > { %697 = vmatpush.bf16.msra.mxu1 %v2153_v7  ;;  %v1384_v29 = vld [vmem:[%s2763_s12] sm:$0xff]  ;;  %v1406_v32 = vld [vmem:[%s2765_s14 + $0x8] sm:$0xff]  ;;  %s2439_s23 = scalar_lea.vmem %s2768_s17, %s2204_s19 }
  0x19   : > { %740 = vperm.xlu0 %2214, %v737_v11   ;;  %v757_v31 = vld [vmem:[%s2759_s8] sm:$0xff]  ;;  %v1385_v45 = vld [vmem:[%s2763_s12 + $0x8] sm:$0xff] }
  0x1a   : > { %773 = vperm.xlu1 %2215, %v759_v12   ;;  %v1370_v34 = vld [vmem:[%s2762_s11] sm:$0xff]  ;;  %v2157_v58 = vld [vmem:[%s2758_s7 + $0x8] sm:$0xff] }
  0x1b   : > { %685 = vmatpush.bf16.msra.mxu0 %v2144_v9  ;;  %v1711_v35 = vld [vmem:[%s2767_s16] sm:$0xff]  ;;  %v2530_v30 = vld [vmem:[%s2753_s2 + $0x48] sm:$0xff] }
  0x1c   : > { %698 = vmatpush.bf16.msra.mxu1 %v2152_v10  ;;  %v708_v41 = vld [vmem:[%s2754_s3] sm:$0xf] }
  0x1d   : > { %763 = vperm.xlu2 %2216, %v757_v31   ;;  %v1405_v52 = vld [vmem:[%s2765_s14] sm:$0xff]  ;;  %v2177_v31 = vld [vmem:[%s2753_s2 + $0x78] sm:$0xff] }
  0x1e   : > { %v2156_v57 = vld [vmem:[%s2758_s7] sm:$0xff] }
  0x1f   : > { %686 = vmatpush.bf16.msra.mxu0 %v2143_v13  ;;  %v2158_v13 = vld [vmem:[%s2760_s9] sm:$0xff] }
  0x20   : > { %699 = vmatpush.bf16.msra.mxu1 %v2151_v14  ;;  %v2159_v14 = vld [vmem:[%s2760_s9 + $0x8] sm:$0xff] }
  0x21   : > { %768 = vperm.xlu0 %2214, %v758_v17   ;;  %v2477_v17 = vld [vmem:[%s2753_s2 + $0x38] sm:$0xff] }
  0x22   : > { %1366 = vperm.xlu1 %2215, %v1363_v27   ;;  %v2511_v27 = vld [vmem:[%s2753_s2 + $0x58] sm:$0xff] }
  0x23   : > { %687 = vmatpush.bf16.msra.mxu0 %v2142_v15  ;;  %v2160_v15 = vld [vmem:[%s2760_s9 + $0x10] sm:$0xff] }
  0x24   : > { %700 = vmatpush.bf16.msra.mxu1 %v2150_v16  ;;  %v2165_v16 = vld [vmem:[%s2753_s2 + $0x18] sm:$0xff] }
  0x25   : > { %1374 = vperm.xlu2 %2216, %v1370_v34   ;;  %v2175_v34 = vld [vmem:[%s2753_s2 + $0x68] sm:$0xff] }
  0x27   : > { %688 = vmatpush.bf16.msra.mxu0 %v2141_v18  ;;  %v2164_v18 = vld [vmem:[%s2753_s2 + $0x10] sm:$0xff] }
  0x28   : > { %701 = vmatpush.bf16.msra.mxu1 %v2149_v19  ;;  %v2163_v19 = vld [vmem:[%s2753_s2 + $0x8] sm:$0xff] }
  0x29   : > { %1379 = vperm.xlu0 %2214, %v1371_v26   ;;  %v2506_v26 = vld [vmem:[%s2753_s2 + $0x28] sm:$0xff] }
  0x2a   : > { %1388 = vperm.xlu1 %2215, %v1384_v29   ;;  %v2523_v29 = vld [vmem:[%s2753_s2 + $0x50] sm:$0xff] }
  0x2b   : > { %689 = vmatpush.bf16.msra.mxu0 %v2140_v20  ;;  %v2161_v20 = vld [vmem:[%s2760_s9 + $0x18] sm:$0xff] }
  0x2c   : > { %702 = vmatpush.bf16.msra.mxu1 %v2148_v21  ;;  %v831_v21 = vld [vmem:[%s2760_s9 + $0x20] sm:$0xf] }
  0x2d   : > { %1393 = vperm.xlu2 %2216, %v1385_v45   ;;  %v851_v22 = vunpack.c.l.b16 %v831_v21  ;;  %v2597_v45 = vld [vmem:[%s2753_s2 + $0xa0] sm:$0xff] }
  0x2e   : > { %690 = vmatmul.bf16.vlgmr.msra.gmra.mxu0 %v552_v24  ;;  %v2497_v24 = vld [vmem:[%s2753_s2 + $0x30] sm:$0xff] }
  0x2f   : > { %703 = vmatmul.bf16.vlgmr.msra.gmra.mxu1 %v553_v25  ;;  %v856_v23 = vpack.c.b16 %v851_v22, %v851_v22  ;;  %v2162_v25 = vld [vmem:[%s2753_s2] sm:$0xff] }
  0x30   : > { %1047 = vmatpush.bf16.msrb.mxu1 %v2511_v27 }
  0x31   : > { %1421 = vperm.xlu0 %2214, %v1407_v28   ;;  %v2518_v28 = vld [vmem:[%s2753_s2 + $0x20] sm:$0xff] }
  0x32   : > { %1426 = vperm.xlu1 %2215, %v1408_v33   ;;  %v2176_v33 = vld [vmem:[%s2753_s2 + $0x70] sm:$0xff] }
  0x34   : > { %1048 = vmatpush.bf16.msrb.mxu1 %v2523_v29 }
  0x35   : > { %1411 = vperm.xlu2 %2216, %v1405_v52   ;;  %v2621_v52 = vld [vmem:[%s2753_s2 + $0xf0] sm:$0xff] }
  0x38   : > { %1049 = vmatpush.bf16.msrb.mxu1 %v2530_v30 }
  0x39   : > { %1416 = vperm.xlu0 %2214, %v1406_v32   ;;  %v2539_v32 = vld [vmem:[%s2753_s2 + $0x40] sm:$0xff] }
  0x3a   : > { %1714 = vperm.xlu1 %2215, %v1711_v35   ;;  %v2551_v35 = vld [vmem:[%s2753_s2 + $0x98] sm:$0xff] }
  0x3b   : > { %1149 = vmatpush.bf16.msrb.mxu0 %v2551_v35 }
  0x3c   : > { %1050 = vmatpush.bf16.msrb.mxu1 %v2539_v32 }
  0x6f   : > { %v779_v61 = vpop.permute.xlu2 %778 }
  0x77   : > { %v764_v5 = vpop.permute.xlu2 %763 }
  0x83   : > { %v714_v44 = vpop.permute.xlu0 %713 }
  0x84   : > { %v748_v50 = vpop.permute.xlu1 %747 }
  0x8b   : > { %v741_v48 = vpop.permute.xlu0 %740 }
  0x8c   : > { %v774_v63 = vpop.permute.xlu1 %773 }
  0x93   : > { %v769_v1 = vpop.permute.xlu0 %768 }
  0xab   : > { %v691_v36 = vpop.f32.mrf.mxu0 }
  0xac   : > { %v704_v37 = vpop.f32.mrf.mxu1 }
  0xad   : > { %v705_v38 = vadd.f32 %v704_v37, %v691_v36  ;;  %v2174_v36 = vld [vmem:[%s2753_s2 + $0x60] sm:$0xff]  ;;  %v2560_v37 = vld [vmem:[%s2753_s2 + $0x90] sm:$0xff] }
  0xae   : > { %1150 = vmatpush.bf16.msrb.mxu0 %v2560_v37 }
  0xaf   : > { %v709_v39 = vpack.c.bf16 %v705_v38, %v705_v38  ;;  %v2566_v38 = vld [vmem:[%s2753_s2 + $0x88] sm:$0xff] }
  0xb1   : > { %v722_v40 = vsel %vm720_vm0, %v709_v39, 0  ;;  %v2571_v39 = vld [vmem:[%s2753_s2 + $0xb8] sm:$0xff] }
  0xb2   : > { %731 = vmatpush.bf16.msra.mxu2 %v722_v40  ;;  %1151 = vmatpush.bf16.msrb.mxu0 %v2566_v38  ;;  %v2578_v40 = vld [vmem:[%s2753_s2 + $0x80] sm:$0xff] }
  0xb3   : > { %v693_v42 = vpop.f32.mrf.mxu0  ;;  %1200 = vmatpush.bf16.msra.mxu1 %v2571_v39 }
  0xb4   : > { %v706_v43 = vpop.f32.mrf.mxu1 }
  0xb5   : > { %1848 = vmatmul.msk.bf16.vlgmr.msra.gmra.mxu2 %vm716_vm1, %v708_v41  ;;  %v2583_v41 = vld [vmem:[%s2753_s2 + $0xb0] sm:$0xff] }
  0xb6   : > { %1152 = vmatpush.bf16.msrb.mxu0 %v2578_v40 }
  0xb7   : > { %1201 = vmatpush.bf16.msra.mxu1 %v2583_v41 }
 0x138   : > { %v733_v46 = vpop.f32.mrf.mxu2 }
 0x139   : > { %v2441_v47 = vadd.f32 %v733_v46, %v714_v44  ;;  %v2590_v44 = vld [vmem:[%s2753_s2 + $0xa8] sm:$0xff] }
 0x13a   : > { %1202 = vmatpush.bf16.msra.mxu1 %v2590_v44 }
 0x13b   : > { %1718 = vst.msk [vmem:[%s2439_s23] sm:$0xff] %vm949_vm2, %v2441_v47  ;;  %v743_v49 = vmul.f32 %v741_v48, %v2441_v47  ;;  %v2602_v48 = vld [vmem:[%s2753_s2 + $0xd8] sm:$0xff] }
 0x13d   : > { %v750_v51 = vadd.f32 %v748_v50, %v743_v49  ;;  %v2608_v50 = vld [vmem:[%s2753_s2 + $0xf8] sm:$0xff] }
 0x13e   : > { %1203 = vmatpush.bf16.msra.mxu1 %v2597_v45  ;;  %1302 = vmatpush.bf16.msra.mxu0 %v2608_v50 }
 0x13f   : > { %v751_v53 = vmax.f32 %v750_v51, 0.0  ;;  %v2615_v51 = vld [vmem:[%s2753_s2 + $0xd0] sm:$0xff] }
 0x140   : > { %v735_v54 = vpop.f32.mrf.mxu2 }
 0x141   : > { %v756_v55 = vpack.c.bf16 %v751_v53, %v751_v53  ;;  %v2627_v54 = vld [vmem:[%s2753_s2 + $0xc8] sm:$0xff] }
 0x142   : > { %1303 = vmatpush.bf16.msra.mxu0 %v2621_v52 }
 0x143   : > { %v798_v56 = vsel %vm720_vm0, %v756_v55, 0 }
 0x144   : > { %807 = vmatpush.bf16.msra.mxu3 %v798_v56  ;;  %v2633_v56 = vld [vmem:[%s2753_s2 + $0xe8] sm:$0xff] }
 0x146   : > { %1304 = vmatpush.bf16.msra.mxu0 %v2633_v56 }
 0x147   : > { %1857 = vmatmul.msk.bf16.vlgmr.msra.gmra.mxu3 %vm716_vm1, %v2156_v57  ;;  %v2638_v57 = vld [vmem:[%s2753_s2 + $0x118] sm:$0xff] }
 0x148   : > { %957 = vmatpush.bf16.msrb.mxu3 %v2477_v17 }
 0x14c   : > { %958 = vmatpush.bf16.msrb.mxu3 %v2497_v24 }
 0x150   : > { %959 = vmatpush.bf16.msrb.mxu3 %v2506_v26 }
 0x154   : > { %960 = vmatpush.bf16.msrb.mxu3 %v2518_v28 }
 0x157   : > { %1858 = vmatmul.msk.bf16.gmra.mxu3 %vm716_vm1, %v2157_v58  ;;  %v2645_v58 = vld [vmem:[%s2753_s2 + $0xc0] sm:$0xff] }
 0x158   : > { %1098 = vmatpush.bf16.msra.mxu3 %v2177_v31 }
 0x15c   : > { %1099 = vmatpush.bf16.msra.mxu3 %v2176_v33 }
 0x160   : > { %1100 = vmatpush.bf16.msra.mxu3 %v2175_v34 }
 0x164   : > { %1101 = vmatpush.bf16.msra.mxu3 %v2174_v36 }
 0x1ca   : > { %v809_v59 = vpop.f32.mrf.mxu3 }
 0x1cb   : > { %v810_v6 = vadd.f32 %v809_v59, %v764_v5  ;;  %v2652_v59 = vld [vmem:[%s2753_s2 + $0xe0] sm:$0xff] }
 0x1cc   : > { %1305 = vmatpush.bf16.msra.mxu0 %v2652_v59 }
 0x1cd   : > { %v819_v11 = vmax.f32 %v810_v6, 0.0 }
 0x1d2   : > { %v811_v60 = vpop.f32.mrf.mxu3 }
 0x1d3   : > { %v812_v3 = vadd.f32 %v811_v60, %v769_v1  ;;  %v2657_v60 = vld [vmem:[%s2753_s2 + $0x110] sm:$0xff] }
 0x1d5   : > { %v820_v9 = vmax.f32 %v812_v3, 0.0 }
 0x1d7   : > { %v832_v12 = vpack.c.bf16 %v820_v9, %v819_v11 }
 0x1da   : > { %v814_v62 = vpop.f32.mrf.mxu3 }
 0x1db   : > { %v815_v0 = vadd.f32 %v814_v62, %v774_v63  ;;  %v2665_v63 = vld [vmem:[%s2753_s2 + $0x108] sm:$0xff] }
 0x1dd   : > { %v821_v7 = vmax.f32 %v815_v0, 0.0  ;;  %v2672_v0 = vld [vmem:[%s2753_s2 + $0x100] sm:$0xff] }
 0x1e2   : > { %v816_v2 = vpop.f32.mrf.mxu3 }
 0x1e3   : > { %v817_v4 = vadd.f32 %v816_v2, %v779_v61 }
 0x1e5   : > { %v822_v8 = vmax.f32 %v817_v4, 0.0 }
 0x1e7   : > { %v833_v10 = vpack.c.bf16 %v822_v8, %v821_v7 }
 0x1e9   : > { %879 = vmatpush.bf16.msrb.mxu2 %v833_v10 }
 0x1ed   : > { %880 = vmatpush.bf16.msrb.mxu2 %v832_v12 }
 0x1f0   : > { %1875 = vmatmul.msk.bf16.vlgmr.msrb.gmra.mxu2 %vm857_vm3, %v2158_v13 }
 0x1f1   : > { %997 = vmatpush.bf16.msra.mxu2 %v2165_v16 }
 0x1f5   : > { %998 = vmatpush.bf16.msra.mxu2 %v2164_v18 }
 0x1f9   : > { %999 = vmatpush.bf16.msra.mxu2 %v2163_v19 }
 0x1fd   : > { %1000 = vmatpush.bf16.msra.mxu2 %v2162_v25 }
 0x200   : > { %1876 = vmatmul.msk.bf16.gmra.mxu2 %vm857_vm3, %v2159_v14 }
 0x201   : > { %1576 = vmatpush.bf16.msrb.mxu2 %v2165_v16 }
 0x205   : > { %1577 = vmatpush.bf16.msrb.mxu2 %v2164_v18 }
 0x209   : > { %1578 = vmatpush.bf16.msrb.mxu2 %v2163_v19 }
 0x20d   : > { %1579 = vmatpush.bf16.msrb.mxu2 %v2162_v25 }
 0x210   : > { %1877 = vmatmul.msk.bf16.gmra.mxu2 %vm857_vm3, %v2160_v15 }
 0x220   : > { %1878 = vmatmul.msk.bf16.gmra.mxu2 %vm857_vm3, %v2161_v20 }
 0x230   : > { %1879 = vmatmul.msk.bf16.gmra.mxu2 %vm857_vm3, %v856_v23 }
 0x273   : > { %v882_v42 = vpop.f32.mrf.mxu2 }
 0x274   : > { %v906_v43 = vpack.c.bf16 %v882_v42, %v882_v42 }
 0x276   : > { %1921 = vmatmul.msk.bf16.vlgmr.msra.gmra.mxu2 %vm949_vm2, %v906_v43 }
 0x277   : > { %1611 = vmatpush.bf16.msra.mxu2 %v2177_v31  ;;  %v1367_v31 = vpop.permute.xlu1 %1366 }
 0x27b   : > { %v884_v46 = vpop.f32.mrf.mxu2  ;;  %1612 = vmatpush.bf16.msra.mxu2 %v2176_v33  ;;  %v1375_v33 = vpop.permute.xlu2 %1374 }
 0x27c   : > { %v915_v49 = vpack.c.bf16 %v884_v46, %v884_v46  ;;  %v1382_v46 = vmul.f32 %v1375_v33, %v2441_v47  ;;  %v2199_v47 = vld [vmem:[%s2764_s13 + $0x8] sm:$0xff] }
 0x27e   : > { %1904 = vmatmul.msk.bf16.vlgmr.msrb.gmra.mxu3 %vm949_vm2, %v915_v49 }
 0x27f   : > { %1251 = vmatpush.bf16.msrb.mxu3 %v2602_v48  ;;  %1613 = vmatpush.bf16.msra.mxu2 %v2175_v34 }
 0x283   : > { %v887_v53 = vpop.f32.mrf.mxu2  ;;  %1252 = vmatpush.bf16.msrb.mxu3 %v2615_v51  ;;  %1614 = vmatpush.bf16.msra.mxu2 %v2174_v36 }
 0x284   : > { %v1006_v55 = vpack.c.bf16 %v887_v53, %v887_v53 }
 0x286   : > { %1946 = vmatmul.msk.bf16.vlgmr.msrb.gmra.mxu1 %vm949_vm2, %v1006_v55  ;;  %v1380_v55 = vpop.permute.xlu0 %1379 }
 0x287   : > { %1253 = vmatpush.bf16.msrb.mxu3 %v2627_v54  ;;  %1353 = vmatpush.bf16.msrb.mxu1 %v2638_v57 }
 0x28b   : > { %v889_v61 = vpop.f32.mrf.mxu2  ;;  %1254 = vmatpush.bf16.msrb.mxu3 %v2645_v58  ;;  %1354 = vmatpush.bf16.msrb.mxu1 %v2657_v60 }
 0x28c   : > { %v1057_v62 = vpack.c.bf16 %v889_v61, %v889_v61  ;;  %v1389_v61 = vpop.permute.xlu1 %1388 }
 0x28e   : > { %1971 = vmatmul.msk.bf16.vlgmr.msra.gmra.mxu3 %vm949_vm2, %v1057_v62  ;;  %v1396_v62 = vadd.f32 %v1389_v61, %v1382_v46 }
 0x28f   : > { %1355 = vmatpush.bf16.msrb.mxu1 %v2665_v63 }
 0x293   : > { %v892_v1 = vpop.f32.mrf.mxu2  ;;  %1356 = vmatpush.bf16.msrb.mxu1 %v2672_v0 }
 0x294   : > { %v1108_v2 = vpack.c.bf16 %v892_v1, %v892_v1 }
 0x296   : > { %1996 = vmatmul.msk.bf16.vlgmr.msrb.gmra.mxu0 %vm949_vm2, %v1108_v2  ;;  %v1394_v2 = vpop.permute.xlu2 %1393 }
 0x29b   : > { %v894_v3 = vpop.f32.mrf.mxu2 }
 0x29c   : > { %v1159_v4 = vpack.c.bf16 %v894_v3, %v894_v3 }
 0x29e   : > { %2021 = vmatmul.msk.bf16.vlgmr.msra.gmra.mxu1 %vm949_vm2, %v1159_v4 }
 0x29f   : > { %1560 = vmatpush.bf16.msra.mxu1 %v2477_v17 }
 0x2a3   : > { %v897_v5 = vpop.f32.mrf.mxu2  ;;  %1561 = vmatpush.bf16.msra.mxu1 %v2497_v24 }
 0x2a4   : > { %v1210_v6 = vpack.c.bf16 %v897_v5, %v897_v5  ;;  %v1398_v5 = vmax.f32 %v1396_v62, 0.0 }
 0x2a6   : > { %2046 = vmatmul.msk.bf16.vlgmr.msrb.gmra.mxu3 %vm949_vm2, %v1210_v6 }
 0x2a7   : > { %1562 = vmatpush.bf16.msra.mxu1 %v2506_v26 }
 0x2ab   : > { %v899_v7 = vpop.f32.mrf.mxu2  ;;  %1563 = vmatpush.bf16.msra.mxu1 %v2518_v28 }
 0x2ac   : > { %v1261_v8 = vpack.c.bf16 %v899_v7, %v899_v7 }
 0x2ae   : > { %2071 = vmatmul.msk.bf16.vlgmr.msra.gmra.mxu0 %vm949_vm2, %v1261_v8  ;;  %v2198_v8 = vld [vmem:[%s2764_s13] sm:$0xff] }
 0x2b3   : > { %v902_v9 = vpop.f32.mrf.mxu2 }
 0x2b4   : > { %v1312_v10 = vpack.c.bf16 %v902_v9, %v902_v9 }
 0x2b6   : > { %2096 = vmatmul.msk.bf16.vlgmr.msrb.gmra.mxu1 %vm949_vm2, %v1312_v10 }
 0x2b7   : > { %1593 = vmatpush.bf16.msrb.mxu1 %v2511_v27 }
 0x2bb   : > { %v904_v11 = vpop.f32.mrf.mxu2  ;;  %1594 = vmatpush.bf16.msrb.mxu1 %v2523_v29 }
 0x2bf   : > { %1595 = vmatpush.bf16.msrb.mxu1 %v2530_v30 }
 0x2c3   : > { %1596 = vmatpush.bf16.msrb.mxu1 %v2539_v32 }
 0x2f9   : > { %v1002_v12 = vpop.f32.mrf.mxu2 }
 0x301   : > { %v962_v13 = vpop.f32.mrf.mxu3  ;;  %v1004_v14 = vpop.f32.mrf.mxu2 }
 0x302   : > { %v1003_v23 = vadd.f32 %v1002_v12, %v962_v13  ;;  %v1412_v14 = vpop.permute.xlu2 %1411 }
 0x303   : > { %v1052_v15 = vpop.f32.mrf.mxu1 }
 0x304   : > { %v1056_v25 = vadd.f32 %v1052_v15, %v1003_v23  ;;  %v1477_v23 = vld [vmem:[%s2766_s15 + $0x20] sm:$0xf] }
 0x309   : > { %v964_v16 = vpop.f32.mrf.mxu3 }
 0x30b   : > { %v1054_v17 = vpop.f32.mrf.mxu1 }
 0x311   : > { %v1103_v18 = vpop.f32.mrf.mxu3 }
 0x312   : > { %v1107_v26 = vadd.f32 %v1103_v18, %v1056_v25 }
 0x313   : > { %v1154_v19 = vpop.f32.mrf.mxu0 }
 0x314   : > { %v1158_v28 = vadd.f32 %v1154_v19, %v1107_v26 }
 0x319   : > { %v1105_v20 = vpop.f32.mrf.mxu3 }
 0x31a   : > { %v2201_v20 = vld [vmem:[%s2766_s15 + $0x8] sm:$0xff] }
 0x31b   : > { %v1156_v21 = vpop.f32.mrf.mxu0  ;;  %v1205_v22 = vpop.f32.mrf.mxu1 }
 0x31c   : > { %v1209_v30 = vadd.f32 %v1205_v22, %v1158_v28  ;;  %v2202_v21 = vld [vmem:[%s2766_s15 + $0x10] sm:$0xff]  ;;  %v2203_v22 = vld [vmem:[%s2766_s15 + $0x18] sm:$0xff] }
 0x323   : > { %v1207_v24 = vpop.f32.mrf.mxu1 }
 0x324   : > { %v1497_v24 = vunpack.c.l.b16 %v1477_v23 }
 0x326   : > { %v1502_v25 = vpack.c.b16 %v1497_v24, %v1497_v24 }
 0x329   : > { %v1256_v27 = vpop.f32.mrf.mxu3 }
 0x32a   : > { %v1260_v32 = vadd.f32 %v1256_v27, %v1209_v30 }
 0x32b   : > { %v1307_v29 = vpop.f32.mrf.mxu0 }
 0x32c   : > { %v1311_v36 = vadd.f32 %v1307_v29, %v1260_v32 }
 0x331   : > { %v1258_v34 = vpop.f32.mrf.mxu3 }
 0x333   : > { %v1309_v42 = vpop.f32.mrf.mxu0  ;;  %v1358_v43 = vpop.f32.mrf.mxu1 }
 0x334   : > { %v1362_v49 = vadd.f32 %v1358_v43, %v1311_v36 }
 0x336   : > { %v1369_v53 = vadd.f32 %v1367_v31, %v1362_v49 }
 0x338   : > { %v1383_v1 = vmul.f32 %v1380_v55, %v1369_v53  ;;  %1719 = vst.msk [vmem:[%s2439_s23 + $0x8] sm:$0xff] %vm949_vm2, %v1369_v53 }
 0x33a   : > { %v1397_v3 = vadd.f32 %v1394_v2, %v1383_v1 }
 0x33b   : > { %v1360_v4 = vpop.f32.mrf.mxu1 }
 0x33c   : > { %v1399_v6 = vmax.f32 %v1397_v3, 0.0 }
 0x33e   : > { %v1404_v7 = vpack.c.bf16 %v1399_v6, %v1398_v5 }
 0x340   : > { %1453 = vmatpush.bf16.msra.mxu3 %v1404_v7 }
 0x343   : > { %2105 = vmatmul.msk.bf16.vlgmr.msra.gmra.mxu3 %vm1439_vm4, %v2198_v8 }
 0x344   : > { %1629 = vmatpush.bf16.msrb.mxu3 %v2551_v35 }
 0x348   : > { %1630 = vmatpush.bf16.msrb.mxu3 %v2560_v37  ;;  %v1422_v37 = vpop.permute.xlu0 %1421 }
 0x34c   : > { %1631 = vmatpush.bf16.msrb.mxu3 %v2566_v38 }
 0x350   : > { %1632 = vmatpush.bf16.msrb.mxu3 %v2578_v40  ;;  %v1417_v38 = vpop.permute.xlu0 %1416  ;;  %v1427_v40 = vpop.permute.xlu1 %1426 }
 0x353   : > { %2106 = vmatmul.msk.bf16.gmra.mxu3 %vm1439_vm4, %v2199_v47 }
 0x354   : > { %1683 = vmatpush.bf16.msra.mxu3 %v2608_v50 }
 0x358   : > { %1684 = vmatpush.bf16.msra.mxu3 %v2621_v52 }
 0x35c   : > { %1685 = vmatpush.bf16.msra.mxu3 %v2633_v56 }
 0x360   : > { %1686 = vmatpush.bf16.msra.mxu3 %v2652_v59  ;;  %v2200_v59 = vld [vmem:[%s2766_s15] sm:$0xff] }
 0x3c6   : > { %v1455_v35 = vpop.f32.mrf.mxu3 }
 0x3c7   : > { %v1456_v15 = vadd.f32 %v1455_v35, %v1412_v14 }
 0x3c9   : > { %v1465_v19 = vmax.f32 %v1456_v15, 0.0 }
 0x3ce   : > { %v1457_v9 = vpop.f32.mrf.mxu3 }
 0x3cf   : > { %v1458_v50 = vadd.f32 %v1457_v9, %v1417_v38  ;;  %v1715_v38 = vpop.permute.xlu1 %1714 }
 0x3d1   : > { %v1466_v52 = vmax.f32 %v1458_v50, 0.0 }
 0x3d3   : > { %v1478_v56 = vpack.c.bf16 %v1466_v52, %v1465_v19 }
 0x3d6   : > { %v1460_v10 = vpop.f32.mrf.mxu3 }
 0x3d7   : > { %v1461_v11 = vadd.f32 %v1460_v10, %v1422_v37 }
 0x3d9   : > { %v1467_v16 = vmax.f32 %v1461_v11, 0.0 }
 0x3de   : > { %v1462_v12 = vpop.f32.mrf.mxu3 }
 0x3df   : > { %v1463_v13 = vadd.f32 %v1462_v12, %v1427_v40 }
 0x3e1   : > { %v1468_v17 = vmax.f32 %v1463_v13, 0.0 }
 0x3e3   : > { %v1479_v18 = vpack.c.bf16 %v1468_v17, %v1467_v16 }
 0x3e5   : > { %1524 = vmatpush.bf16.msrb.mxu0 %v1479_v18 }
 0x3e9   : > { %1525 = vmatpush.bf16.msrb.mxu0 %v1478_v56 }
 0x3ec   : > { %2123 = vmatmul.msk.bf16.vlgmr.msrb.gmra.mxu0 %vm857_vm3, %v2200_v59 }
 0x3fc   : > { %2124 = vmatmul.msk.bf16.gmra.mxu0 %vm857_vm3, %v2201_v20 }
 0x40c   : > { %2125 = vmatmul.msk.bf16.gmra.mxu0 %vm857_vm3, %v2202_v21 }
 0x41c   : > { %2126 = vmatmul.msk.bf16.gmra.mxu0 %vm857_vm3, %v2203_v22 }
 0x42c   : > { %2127 = vmatmul.msk.bf16.gmra.mxu0 %vm857_vm3, %v1502_v25 }
 0x469   : > { %v1527_v26 = vpop.f32.mrf.mxu0 }
 0x46a   : > { %v1551_v27 = vpack.c.bf16 %v1527_v26, %v1527_v26 }
 0x46c   : > { %2129 = vmatmul.msk.bf16.vlgmr.msrb.gmra.mxu2 %vm949_vm2, %v1551_v27 }
 0x46d   : > { %1665 = vmatpush.bf16.msrb.mxu2 %v2602_v48 }
 0x471   : > { %v1529_v28 = vpop.f32.mrf.mxu0  ;;  %1666 = vmatpush.bf16.msrb.mxu2 %v2615_v51 }
 0x472   : > { %v1552_v29 = vpack.c.bf16 %v1529_v28, %v1529_v28 }
 0x474   : > { %2128 = vmatmul.msk.bf16.vlgmr.msra.gmra.mxu1 %vm949_vm2, %v1552_v29 }
 0x475   : > { %1647 = vmatpush.bf16.msra.mxu1 %v2571_v39  ;;  %1667 = vmatpush.bf16.msrb.mxu2 %v2627_v54 }
 0x479   : > { %v1532_v30 = vpop.f32.mrf.mxu0  ;;  %1648 = vmatpush.bf16.msra.mxu1 %v2583_v41  ;;  %1668 = vmatpush.bf16.msrb.mxu2 %v2645_v58 }
 0x47a   : > { %v1585_v48 = vpack.c.bf16 %v1532_v30, %v1532_v30 }
 0x47d   : > { %1649 = vmatpush.bf16.msra.mxu1 %v2590_v44 }
 0x481   : > { %v1534_v31 = vpop.f32.mrf.mxu0  ;;  %1650 = vmatpush.bf16.msra.mxu1 %v2597_v45 }
 0x482   : > { %v1603_v32 = vpack.c.bf16 %v1534_v31, %v1534_v31 }
 0x484   : > { %2130 = vmatmul.msk.bf16.vlgmr.msrb.gmra.mxu1 %vm949_vm2, %v1585_v48  ;;  %2131 = vmatmul.msk.bf16.vlgmr.msra.gmra.mxu2 %vm949_vm2, %v1603_v32 }
 0x485   : > { %1701 = vmatpush.bf16.msrb.mxu1 %v2638_v57 }
 0x489   : > { %v1537_v39 = vpop.f32.mrf.mxu0  ;;  %1702 = vmatpush.bf16.msrb.mxu1 %v2657_v60 }
 0x48a   : > { %v1621_v51 = vpack.c.bf16 %v1537_v39, %v1537_v39 }
 0x48c   : > { %2132 = vmatmul.msk.bf16.vlgmr.msrb.gmra.mxu3 %vm949_vm2, %v1621_v51 }
 0x48d   : > { %1703 = vmatpush.bf16.msrb.mxu1 %v2665_v63 }
 0x491   : > { %v1539_v41 = vpop.f32.mrf.mxu0  ;;  %1704 = vmatpush.bf16.msrb.mxu1 %v2672_v0 }
 0x492   : > { %v1639_v44 = vpack.c.bf16 %v1539_v41, %v1539_v41 }
 0x494   : > { %2133 = vmatmul.msk.bf16.vlgmr.msra.gmra.mxu1 %vm949_vm2, %v1639_v44 }
 0x499   : > { %v1542_v45 = vpop.f32.mrf.mxu0 }
 0x49a   : > { %v1657_v54 = vpack.c.bf16 %v1542_v45, %v1542_v45 }
 0x49c   : > { %2134 = vmatmul.msk.bf16.vlgmr.msrb.gmra.mxu2 %vm949_vm2, %v1657_v54 }
 0x4a1   : > { %v1544_v58 = vpop.f32.mrf.mxu0 }
 0x4a2   : > { %v1675_v57 = vpack.c.bf16 %v1544_v58, %v1544_v58 }
 0x4a4   : > { %2135 = vmatmul.msk.bf16.vlgmr.msra.gmra.mxu3 %vm949_vm2, %v1675_v57 }
 0x4a9   : > { %v1547_v60 = vpop.f32.mrf.mxu0 }
 0x4aa   : > { %v1693_v33 = vpack.c.bf16 %v1547_v60, %v1547_v60 }
 0x4ac   : > { %2136 = vmatmul.msk.bf16.vlgmr.msrb.gmra.mxu1 %vm949_vm2, %v1693_v33 }
 0x4b1   : > { %v1549_v34 = vpop.f32.mrf.mxu0 }
 0x4ef   : > { %v1581_v63 = vpop.f32.mrf.mxu2 }
 0x4f1   : > { %v1565_v36 = vpop.f32.mrf.mxu1 }
 0x4f2   : > { %v1582_v2 = vadd.f32 %v1581_v63, %v1565_v36 }
 0x4f7   : > { %v1583_v42 = vpop.f32.mrf.mxu2 }
 0x4f9   : > { %v1567_v0 = vpop.f32.mrf.mxu1 }
 0x501   : > { %v1598_v43 = vpop.f32.mrf.mxu1 }
 0x502   : > { %v1602_v3 = vadd.f32 %v1598_v43, %v1582_v2 }
 0x507   : > { %v1616_v46 = vpop.f32.mrf.mxu2 }
 0x508   : > { %v1620_v4 = vadd.f32 %v1616_v46, %v1602_v3 }
 0x509   : > { %v1600_v49 = vpop.f32.mrf.mxu1 }
 0x50f   : > { %v1618_v53 = vpop.f32.mrf.mxu2  ;;  %v1634_v55 = vpop.f32.mrf.mxu3 }
 0x510   : > { %v1638_v6 = vadd.f32 %v1634_v55, %v1620_v4 }
 0x511   : > { %v1652_v61 = vpop.f32.mrf.mxu1 }
 0x512   : > { %v1656_v7 = vadd.f32 %v1652_v61, %v1638_v6 }
 0x517   : > { %v1636_v62 = vpop.f32.mrf.mxu3 }
 0x519   : > { %v1654_v1 = vpop.f32.mrf.mxu1 }
 0x51f   : > { %v1670_v5 = vpop.f32.mrf.mxu2 }
 0x520   : > { %v1674_v8 = vadd.f32 %v1670_v5, %v1656_v7 }
 0x527   : > { %v1688_v47 = vpop.f32.mrf.mxu3  ;;  %v1672_v35 = vpop.f32.mrf.mxu2 }
 0x528   : > { %v1692_v9 = vadd.f32 %v1688_v47, %v1674_v8 }
 0x529   : > { %v1706_v37 = vpop.f32.mrf.mxu1 }
 0x52a   : > { %v1710_v10 = vadd.f32 %v1706_v37, %v1692_v9 }
 0x52c   : > { %v1717_v11 = vadd.f32 %v1715_v38, %v1710_v10 }
 0x52e   : > { %1720 = vst.msk [vmem:[%s2439_s23 + $0x10] sm:$0xff] %vm949_vm2, %v1717_v11 }
 0x52f   : > { %v1690_v40 = vpop.f32.mrf.mxu3 }
 0x531   : > { %v1708_v12 = vpop.f32.mrf.mxu1 }
 0x532 PF: > { %s27_s24 = sadd.s32 1, %s2223_s24  }
 0x533   : > { %p24_p4 = scmp.ge.s32.totalorder %s27_s24, 4  }
 0x535   :  { %26 = sbr.rel (!%p24_p4) target bundleno = 4 (0x4), region = 126 }

</bundles_post_ra>
